<compile_context>
chip_gen: v5e
topology: v5e:2x2
jax: 0.10.0
libtpu: 0.0.40
codegen_flags: <defaults>
</compile_context>

<pallas_src>
import jax
import jax.numpy as jnp
from jax import lax
from jax.experimental import pallas as pl
from jax.experimental.pallas import tpu as pltpu


def _proj_kernel(x_ref, w_ref, pb_ref, o_ref):
    # x_ref:  (tb, N, P)  activation tile (native dtype)
    # w_ref:  (P, D)      pre-transposed weight, resident (compute dtype)
    # pb_ref: (1, N, D)   pos_embedding[:, 1:] + bias, f32, resident
    # o_ref:  (tb, N, D)  final patch rows in out dtype
    tb, n, p = x_ref.shape
    d = w_ref.shape[1]
    # Cast in-kernel (VPU, free relative to MXU work) instead of a wrapper pass.
    x = x_ref[...].astype(w_ref.dtype).reshape(tb * n, p)
    y = lax.dot_general(
        x, w_ref[...],
        dimension_numbers=(((1,), (0,)), ((), ())),
        preferred_element_type=jnp.float32,
    ).reshape(tb, n, d)
    # Fused epilogue: add (pos + bias) in f32, cast once to the output dtype.
    o_ref[...] = (y + pb_ref[...]).astype(o_ref.dtype)


def linear_projection_cls(x, weight, bias, cls_token, pos_embedding,
                          *, compute_dtype=None):
    """x: [B, N, P]; weight: [D, P] (nn.Linear layout); bias: [D];
    cls_token: [1, D]; pos_embedding: [1, N+1, D].  Returns [B, N+1, D].

    compute_dtype: dtype fed to the MXU (e.g. jnp.bfloat16 on v6e/v7x);
    accumulation is always f32.  Defaults to x.dtype."""
    B, N, P = x.shape
    D, P_w = weight.shape
    assert P_w == P, "weight in_features mismatch"
    assert cls_token.shape == (1, D), "cls_token must be (1, D)"
    assert pos_embedding.shape == (1, N + 1, D), "pos_embedding must be (1, N+1, D)"

    out_dtype = x.dtype
    cdt = compute_dtype if compute_dtype is not None else x.dtype

    # --- one-time parameter prep (would live at parameter-load time) ---------
    w_t = weight.T.astype(cdt)                               # [P, D], no per-step transpose
    pos_f32 = pos_embedding.astype(jnp.float32)
    pos_bias = pos_f32[:, 1:, :] + bias.astype(jnp.float32)[None, None, :]  # [1, N, D]

    # --- batch-tile selection -----------------------------------------------
    rows_target = 512                               # ~85% of HBM roofline per review
    tb = max(1, min(B, rows_target // max(N, 1)))   # whole batch elements per step
    if B >= 2 and pl.cdiv(B, tb) < 2:
        tb = (B + 1) // 2                           # >= 2 grid steps for v7x dual-TC
    grid = (pl.cdiv(B, tb),)                        # partial last block OK (no pad copy)

    patch_rows = pl.pallas_call(
        _proj_kernel,
        out_shape=jax.ShapeDtypeStruct((B, N, D), out_dtype),
        grid_spec=pltpu.PrefetchScalarGridSpec(
            num_scalar_prefetch=0,
            grid=grid,
            in_specs=[
                pl.BlockSpec((tb, N, P), lambda i: (i, 0, 0)),   # activation tile
                pl.BlockSpec((P, D), lambda i: (0, 0)),          # resident weight
                pl.BlockSpec((1, N, D), lambda i: (0, 0, 0)),    # resident pos+bias (f32)
            ],
            out_specs=pl.BlockSpec((tb, N, D), lambda i: (i, 0, 0)),
        ),
        compiler_params=pltpu.CompilerParams(
            dimension_semantics=("parallel",)),
    )(x, w_t, pos_bias)

    # Batch-invariant cls row + concat: one cheap fused XLA pass (writing at a
    # row-1 offset inside the kernel would force misaligned/masked stores).
    cls_row = (cls_token.astype(jnp.float32) + pos_f32[:, 0, :]).astype(out_dtype)  # [1, D]
    cls_rows = jnp.broadcast_to(cls_row[:, None, :], (B, 1, D))
    # TODO(synk): nn.Dropout treated as identity (inference / eval mode).
    return jnp.concatenate([cls_rows, patch_rows], axis=1)


def reference(x, weight, bias, cls_token, pos_embedding):
    proj = jnp.einsum("bnp,dp->bnd", x, weight) + bias
    cls = jnp.broadcast_to(cls_token[None, :, :], (x.shape[0], 1, weight.shape[0]))
    return jnp.concatenate([cls, proj], axis=1) + pos_embedding


if __name__ == "__main__":
    # Small shapes consistent with the module:
    #   patch_vec_size P = 48 (C=3, p=4), num_patches N = 8, latent D = 32
    B, N, P, D = 2, 8, 48, 32
    drop_rate = 0.1  # identity in eval mode

    key = jax.random.PRNGKey(0)
    kx, kw, kb, kc, kp = jax.random.split(key, 5)

    x = jax.random.normal(kx, (B, N, P), dtype=jnp.float32)
    weight = jax.random.normal(kw, (D, P), dtype=jnp.float32) * 0.02   # nn.Linear [out, in]
    bias = jax.random.normal(kb, (D,), dtype=jnp.float32) * 0.02
    cls_token = jax.random.normal(kc, (1, D), dtype=jnp.float32)
    pos_embedding = jax.random.normal(kp, (1, N + 1, D), dtype=jnp.float32)

    y_ref = reference(x, weight, bias, cls_token, pos_embedding)

    # f32 path (tight tolerance).
    y = jax.block_until_ready(
        linear_projection_cls(x, weight, bias, cls_token, pos_embedding))
    assert y.shape == (B, N + 1, D)
    assert jnp.allclose(y, y_ref, atol=1e-4, rtol=1e-4), "f32 mismatch vs reference"

    # bf16 MXU path (recommended default on v6e/v7x); looser tolerance for bf16 inputs.
    y_bf16 = jax.block_until_ready(
        linear_projection_cls(x, weight, bias, cls_token, pos_embedding,
                              compute_dtype=jnp.bfloat16))
    assert y_bf16.shape == (B, N + 1, D)
    assert jnp.allclose(y_bf16, y_ref, atol=5e-2, rtol=5e-2), "bf16 mismatch vs reference"

    print("KERNEL_OK")
</pallas_src>

<mosaic_0001>
module attributes {stable_mosaic.version = 11 : i64} {
  func.func @_proj_kernel(%arg0: i32, %arg1: memref<1x8x48xf32, #tpu.memory_space<vmem>>, %arg2: memref<48x32xf32, #tpu.memory_space<vmem>>, %arg3: memref<1x8x32xf32, #tpu.memory_space<vmem>>, %arg4: memref<1x8x32xf32, #tpu.memory_space<vmem>>) attributes {dimension_semantics = [#tpu.dimension_semantics<parallel>], iteration_bounds = array<i64: 2>, scalar_prefetch = 0 : i64, scratch_operands = 0 : i64, tpu.core_type = #tpu.core_type<tc>, window_params = [{transform_indices = @transform_0, window_bounds = array<i64: 1, 8, 48>}, {pipeline_mode = #tpu.pipeline_mode<synchronous>, transform_indices = @transform_1, window_bounds = array<i64: 48, 32>}, {pipeline_mode = #tpu.pipeline_mode<synchronous>, transform_indices = @transform_2, window_bounds = array<i64: 1, 8, 32>}, {transform_indices = @transform_3, window_bounds = array<i64: 1, 8, 32>}]} {
    %c0 = arith.constant 0 : index
    %c0_0 = arith.constant 0 : index
    %c0_1 = arith.constant 0 : index
    %0 = vector.load %arg1[%c0, %c0_0, %c0_1] : memref<1x8x48xf32, #tpu.memory_space<vmem>>, vector<1x8x48xf32>
    %1 = vector.shape_cast %0 : vector<1x8x48xf32> to vector<8x48xf32>
    %c0_2 = arith.constant 0 : index
    %c0_3 = arith.constant 0 : index
    %2 = vector.load %arg2[%c0_2, %c0_3] : memref<48x32xf32, #tpu.memory_space<vmem>>, vector<48x32xf32>
    %cst = arith.constant dense<0.000000e+00> : vector<8x32xf32>
    %3 = tpu.matmul %1, %2, %cst {dimension_numbers = #tpu.dot_dimension_numbers<[1], [0], [0], [1], [0, 0, 1, 1], [], []>} : vector<8x48xf32>, vector<48x32xf32>, vector<8x32xf32> -> vector<8x32xf32>
    %4 = vector.shape_cast %3 : vector<8x32xf32> to vector<1x8x32xf32>
    %c0_4 = arith.constant 0 : index
    %c0_5 = arith.constant 0 : index
    %c0_6 = arith.constant 0 : index
    %5 = vector.load %arg3[%c0_4, %c0_5, %c0_6] : memref<1x8x32xf32, #tpu.memory_space<vmem>>, vector<1x8x32xf32>
    %6 = arith.addf %4, %5 : vector<1x8x32xf32>
    %c0_7 = arith.constant 0 : index
    %c0_8 = arith.constant 0 : index
    %c0_9 = arith.constant 0 : index
    %7 = vector.load %arg4[%c0_7, %c0_8, %c0_9] : memref<1x8x32xf32, #tpu.memory_space<vmem>>, vector<1x8x32xf32>
    tpu.vector_store %arg4[%c0_7, %c0_8, %c0_9], %6 {strides = array<i32>} : memref<1x8x32xf32, #tpu.memory_space<vmem>>, vector<1x8x32xf32>,
    return
  }
  func.func @transform_0(%arg0: i32) -> (i32, i32, i32) {
    %c0_i32 = arith.constant 0 : i32
    %c0_i32_0 = arith.constant 0 : i32
    %c0_i32_1 = arith.constant 0 : i32
    return %arg0, %c0_i32, %c0_i32_0 : i32, i32, i32
  }
  func.func @transform_1(%arg0: i32) -> (i32, i32) {
    %c0_i32 = arith.constant 0 : i32
    %c0_i32_0 = arith.constant 0 : i32
    %c0_i32_1 = arith.constant 0 : i32
    return %c0_i32, %c0_i32_0 : i32, i32
  }
  func.func @transform_2(%arg0: i32) -> (i32, i32, i32) {
    %c0_i32 = arith.constant 0 : i32
    %c0_i32_0 = arith.constant 0 : i32
    %c0_i32_1 = arith.constant 0 : i32
    %c0_i32_2 = arith.constant 0 : i32
    return %c0_i32, %c0_i32_0, %c0_i32_1 : i32, i32, i32
  }
  func.func @transform_3(%arg0: i32) -> (i32, i32, i32) {
    %c0_i32 = arith.constant 0 : i32
    %c0_i32_0 = arith.constant 0 : i32
    %c0_i32_1 = arith.constant 0 : i32
    return %arg0, %c0_i32, %c0_i32_0 : i32, i32, i32
  }
}

</mosaic_0001>

<bundles_post_ra>
// kernel: tpu_custom_call.1
= control target key start
LH: loop header
LB: loop body
LE: loop exit
PB: predicated region body
PF: predicated region fallthrough
CT: control target
= control target key end

     0   :  { %8 = vsyncpa [#allocation3], 0  ;;  %s516_s0 = inlined_call_operand.vmem [shape: f32[2,8,48], index: 0, kind: input, shape index: {}]   ;;  %s517_s1 = inlined_call_operand.vmem [shape: f32[48,32], index: 1, kind: input, shape index: {}]   ;;  %s518_s2 = inlined_call_operand.vmem [shape: f32[1,8,32], index: 2, kind: input, shape index: {}]   ;;  %s519_s3 = inlined_call_operand.hbm [shape: f32[2,8,32], index: 3, kind: output, shape index: {}]  }
   0x1   :  { %10 = vsyncpa [#allocation3 + $0x1], 0  ;;  %s410_s12 = smov 0   ;;  %s412_s13 = smov 0  }
   0x2   :  { %s414_s14 = smov 0   ;;  %s416_s15 = smov 0  }
   0x3 LB: > { %s431_s16 = sadd.s32 4294967295, %s388_s15   ;;  %s276_s17 = sadd.s32 4294967294, %s388_s15   ;;  %s388_s15 = sphi %s416_s15, %s525_s15   ;;  %s384_s14 = sphi %s414_s14, %s524_s14   ;;  %s380_s13 = sphi %s412_s13, %s523_s13   ;;  %s376_s12 = sphi %s410_s12, %s522_s12  }
   0x4   : > { %s435_s18 = sadd.s32 1, %s388_s15   ;;  %s91_s19 = sadd.s32 1, %s384_s14 }
   0x5   : > { %s88_s20 = ssub.s32 %s388_s15, %s435_s18  ;;  %p101_p0 = scmp.ne.s32.totalorder %s384_s14, %s380_s13 }
   0x6   : > { %p89_p1 = scmp.eq.s32.totalorder %s88_s20, 0  ;;  %p102_p2 = scmp.eq.s32.totalorder %s431_s16, 1 }
   0x7   : > { %p107_p3 = scmp.ne.s32.totalorder %s380_s13, %s376_s12  ;;  %p108_p4 = scmp.eq.s32.totalorder %s276_s17, 1 }
   0x8   : > { %s446_s21 = scalar_select %p89_p1, %s384_s14, %s91_s19  }
   0x9   : > { %p448_p5 = por %p102_p2, %p101_p0  ;;  %p452_p6 = por %p108_p4, %p107_p3 }
   0xa   : > { %p279_p7 = scmp.ge.s32.totalorder %s388_s15, 1  ;;  %p139_p8 = scmp.lt.s32.totalorder %s388_s15, 3 }
   0xc   : > { %p140_p9 = pnand %p279_p7, %p139_p8 }
   0xd   : > { %p162_p10 = scmp.lt.s32.totalorder (!%p140_p9), %s431_s16, 1  ;;  %s159_s20 = sand.u32 (!%p140_p9), 1, %s380_s13  }
   0xe   : > { %143 = sbr.rel (%p140_p9) target bundleno = 162 (0xa2), region = 32  ;;  %s280_s24 = sshll.u32 (!%p140_p9), %s159_s20, 3 }
   0xf   : > { %s284_s25 = sshll.u32 (!%p140_p9), %s431_s16, 3  ;;  %s161_s4 = scalar_lea.vmem (!%p140_p9), [#allocation2], %s280_s24 }
  0x10   : > { %s212_s28 = scalar_lea.hbm (!%p140_p9), %s519_s3, %s284_s25  ;;  %s214_s5 = sshll.u32 (!%p140_p9), %s161_s4, 4  ;;  %s215_s5 = int_to_ptr.vmem [resolvable:$true] %s214_s5 }
  0x11   : > { %s202_s7 = scalar_lea.sflag (!%p140_p9), [#allocation3], %s159_s20 }
  0x13   : > { %v172_v0 = vld [vmem:[%s517_s1 + $0x28] sm:$0xff]  ;;  %v171_v1 = vld [vmem:[%s517_s1 + $0x20] sm:$0xff]  ;;  %v170_v2 = vld [vmem:[%s517_s1 + $0x18] sm:$0xff]  ;;  %s163_s30 = scalar_select %p162_p10, %s431_s16, 1  ;;  %vm173_vm0 = vcmask 392192   ;;  %vm199_vm1 = vcmask 261120  }
  0x14   : > { %187 = vmatpush.msra.mxu0 %v172_v0  ;;  %v169_v3 = vld [vmem:[%s517_s1 + $0x10] sm:$0xff]  ;;  %v168_v4 = vld [vmem:[%s517_s1 + $0x8] sm:$0xff]  ;;  %v167_v5 = vld [vmem:[%s517_s1] sm:$0xff] }
  0x15   : > { %s281_s6 = sshll.u32 %s163_s30, 3  ;;  %v197_v7 = vld [vmem:[%s518_s2] sm:$0xff] }
  0x16   : > { %188 = vmatpush.msra.mxu0 %v171_v1  ;;  %s165_s11 = scalar_lea.vmem %s516_s0, %s281_s6  ;;  %s216_s6 = sshll.u32 %s212_s28, 4  ;;  %s217_s6 = int_to_ptr.hbm [resolvable:$true] %s216_s6 }
  0x17   : > { %v166_v6 = vld [vmem:[%s165_s11] sm:$0xff]  ;;  %s340_s16 = sshra.s32 %s217_s6, 4  ;;  %s346_s11 = scalar_lea.hbm %s519_s3, 16  ;;  %s341_s16 = int_to_ptr.hbm [resolvable:$true] %s340_s16 }
  0x18   : > { %189 = vmatpush.msra.mxu0 %v170_v2  ;;  %s342_s8 = scalar_lea.hbm %s341_s16, 8  ;;  %p347_p0 = scmp.lt.s32.totalorder %s341_s16, %s519_s3 }
  0x19   : > { %p343_p11 = scmp.ne.s32.totalorder %s341_s16, %s342_s8  ;;  %p348_p1 = scmp.lt.s32.totalorder %s346_s11, %s342_s8 }
  0x1a   : > { %190 = vmatpush.msra.mxu0 %v169_v3 }
  0x1b   : > { %p344_p12 = pnand %p343_p11, %p448_p5  ;;  %p349_p2 = por %p348_p1, %p347_p0 }
  0x1c   : > { %191 = vmatpush.msra.mxu0 %v168_v4 }
  0x1d   : > { %p345_p13 = pneg %p344_p12 }
  0x1e   : > { %192 = vmatpush.msra.mxu0 %v167_v5 }
  0x1f   : > { %282 = vmatmul.msk.f32.vlgmr.msra.gmra.mxu0 %vm173_vm0, %v166_v6  ;;  %p350_p3 = pnand %p349_p2, %p345_p13 }
  0x9c   : > { %v194_v8 = vpop.f32.mrf.mxu0 }
  0x9d   : > { %v198_v9 = vadd.f32 %v197_v7, %v194_v8 }
  0x9f   : > { %200 = vst.msk [vmem:[%s161_s4] sm:$0xff] %vm199_vm1, %v198_v9 }
  0xa0   : > { %353 = shalt.err (!%p350_p3)
}
  0xa1   : > { %287 = dma.vmem_to_hbm [thread:$0]  (%p448_p5), %s215_s5, 128, %s217_s6, %s202_s7  }
  0xa2 PF: > { %p293_p4 = scmp.ge.s32.totalorder %s388_s15, 2  ;;  %s228_s20 = sand.u32 1, %s376_s12  }
  0xa3   : > { %s229_s24 = scalar_lea.sflag [#allocation3], %s228_s20 }
  0xa4   : > { %p290_p7 = pnand %p293_p4, %p452_p6 }
  0xa6   : > { %p291_p8 = pneg %p290_p7 }
  0xa8   : > { %371 = dma.done.wait (%p291_p8), %s229_s24, 128  }
  0xa9   : > { %373 = vsyncadd (%p291_p8), %s229_s24, 4294967168  ;;  %p13_p9 = scmp.ge.s32.totalorder %s435_s18, 4   ;;  %s522_s12 = smov %s380_s13 }
  0xaa   : > { %s523_s13 = smov %s384_s14  ;;  %s524_s14 = smov %s446_s21 }
  0xab   : > { %s525_s15 = smov %s435_s18  ;;  %15 = sbr.rel (!%p13_p9) target bundleno = 3 (0x3), region = 67 }
  0xb0   :  { %235 = vsyncpa [#allocation3], 1 }
  0xb1   :  { %237 = vsyncpa [#allocation3 + $0x1], 1 }

</bundles_post_ra>
